<compile_context>
chip_gen: v5e
topology: v5e:2x2
jax: 0.10.0
libtpu: 0.0.40
codegen_flags: <defaults>
</compile_context>

<pallas_src>
import functools

import jax
import jax.numpy as jnp
from jax.experimental import pallas as pl
from jax.experimental.pallas import tpu as pltpu


# ----------------------------------------------------------------------------
# Kernel 1: fused QKV projection  (q pre-scaled by 1/sqrt(dh))
# ----------------------------------------------------------------------------
def qkv_proj_kernel(z_ref, w_ref, b_ref, q_ref, k_ref, v_ref, *, scale, d):
    # z: [tm, in_pad] (bf16), w: [in_pad, 3*d] (bf16, pre-transposed+fused),
    # b: [1, 3*d] (f32).  One wide MXU matmul, f32 accumulation.
    acc = jnp.dot(z_ref[...], w_ref[...],
                  preferred_element_type=jnp.float32) + b_ref[...]
    q = acc[:, 0 * d:1 * d] * scale          # fold 1/sqrt(dh) into q
    k = acc[:, 1 * d:2 * d]
    v = acc[:, 2 * d:3 * d]
    q_ref[...] = q.astype(q_ref.dtype)
    k_ref[...] = k.astype(k_ref.dtype)
    v_ref[...] = v.astype(v_ref.dtype)


# ----------------------------------------------------------------------------
# Kernel 2: flash attention with online softmax
# ----------------------------------------------------------------------------
def flash_attention_kernel(q_ref, k_ref, v_ref, o_ref, m_sc, l_sc, acc_sc):
    j = pl.program_id(1)

    @pl.when(j == 0)
    def _init():
        m_sc[...] = jnp.full_like(m_sc, -jnp.inf)
        l_sc[...] = jnp.zeros_like(l_sc)
        acc_sc[...] = jnp.zeros_like(acc_sc)

    # Scores: contract the last dims directly ('nd,md->nm'); no k.T copy.
    s = jax.lax.dot_general(
        q_ref[...], k_ref[...],
        dimension_numbers=(((1,), (1,)), ((), ())),
        preferred_element_type=jnp.float32)          # [tq, tk], f32

    m_prev = m_sc[...]
    m_new = jnp.maximum(m_prev, jnp.max(s, axis=-1, keepdims=True))
    alpha = jnp.exp(m_prev - m_new)                  # rescale of previous state
    p = jnp.exp(s - m_new)                           # f32 softmax numerator

    l_sc[...] = alpha * l_sc[...] + jnp.sum(p, axis=-1, keepdims=True)
    acc_sc[...] = alpha * acc_sc[...] + jnp.dot(
        p.astype(v_ref.dtype), v_ref[...],
        preferred_element_type=jnp.float32)
    m_sc[...] = m_new

    @pl.when(j == pl.num_programs(1) - 1)
    def _finalize():
        inv_l = pl.reciprocal(l_sc[...], approx=True)
        o_ref[...] = (acc_sc[...] * inv_l).astype(o_ref.dtype)


# ----------------------------------------------------------------------------
# Wrapper
# ----------------------------------------------------------------------------
def _round_up(x, m):
    return ((x + m - 1) // m) * m


def _pad_axis(x, target, axis):
    pad = target - x.shape[axis]
    if pad == 0:
        return x
    widths = [(0, 0)] * x.ndim
    widths[axis] = (0, pad)
    return jnp.pad(x, widths)


def self_attention(z, wq, bq, wk, bk, wv, bv, *,
                   tq=128, tk=128, tm=128,
                   compute_dtype=jnp.bfloat16):
    n, in_dim = z.shape
    out_dim = wq.shape[0]
    scale = 1.0 / (out_dim ** 0.5)

    # Lane-dense padded feature dims (multiples of 128). Zero padding of the
    # weights/bias does not change q@k.T or A@v.
    in_pad = _round_up(in_dim, 128)
    d_pad = _round_up(out_dim, 128)

    # Clamp tiles to the sequence length; require exact tiling of N.
    tm, tq, tk = min(tm, n), min(tq, n), min(tk, n)
    assert n % tm == 0 and n % tq == 0 and n % tk == 0, (
        "sequence length must be divisible by the chosen tiles")

    # Pre-transpose + fuse the projection weights once in XLA (loop-invariant).
    def pad_w(w):  # [out_dim, in_dim] -> [d_pad, in_pad]
        return _pad_axis(_pad_axis(w, d_pad, 0), in_pad, 1)

    w_qkv = jnp.concatenate([pad_w(wq), pad_w(wk), pad_w(wv)], axis=0)  # [3*d_pad, in_pad]
    w_qkv_t = jnp.transpose(w_qkv).astype(compute_dtype)                # [in_pad, 3*d_pad]
    b_qkv = jnp.concatenate(
        [_pad_axis(bq, d_pad, 0), _pad_axis(bk, d_pad, 0), _pad_axis(bv, d_pad, 0)],
        axis=0).reshape(1, 3 * d_pad).astype(jnp.float32)

    z_p = _pad_axis(z, in_pad, 1).astype(compute_dtype)                 # [n, in_pad]

    cparams = pltpu.CompilerParams(
        dimension_semantics=("parallel",),
        vmem_limit_bytes=32 * 1024 * 1024,
    )

    # ---- Pass 1: fused QKV projection --------------------------------------
    q, k, v = pl.pallas_call(
        functools.partial(qkv_proj_kernel, scale=scale, d=d_pad),
        out_shape=(
            jax.ShapeDtypeStruct((n, d_pad), compute_dtype),
            jax.ShapeDtypeStruct((n, d_pad), compute_dtype),
            jax.ShapeDtypeStruct((n, d_pad), compute_dtype),
        ),
        grid_spec=pltpu.PrefetchScalarGridSpec(
            num_scalar_prefetch=0,
            grid=(n // tm,),
            in_specs=[
                pl.BlockSpec((tm, in_pad), lambda i: (i, 0)),
                pl.BlockSpec((in_pad, 3 * d_pad), lambda i: (0, 0)),  # VMEM-resident
                pl.BlockSpec((1, 3 * d_pad), lambda i: (0, 0)),       # VMEM-resident
            ],
            out_specs=[
                pl.BlockSpec((tm, d_pad), lambda i: (i, 0)),
                pl.BlockSpec((tm, d_pad), lambda i: (i, 0)),
                pl.BlockSpec((tm, d_pad), lambda i: (i, 0)),
            ],
        ),
        compiler_params=cparams,
    )(z_p, w_qkv_t, b_qkv)

    # ---- Pass 2: flash attention --------------------------------------------
    o_pad = pl.pallas_call(
        flash_attention_kernel,
        out_shape=jax.ShapeDtypeStruct((n, d_pad), jnp.float32),
        grid_spec=pltpu.PrefetchScalarGridSpec(
            num_scalar_prefetch=0,
            grid=(n // tq, n // tk),
            in_specs=[
                pl.BlockSpec((tq, d_pad), lambda i, j: (i, 0)),
                pl.BlockSpec((tk, d_pad), lambda i, j: (j, 0)),
                pl.BlockSpec((tk, d_pad), lambda i, j: (j, 0)),
            ],
            out_specs=pl.BlockSpec((tq, d_pad), lambda i, j: (i, 0)),
            scratch_shapes=[
                pltpu.VMEM((tq, 1), jnp.float32),      # running max m
                pltpu.VMEM((tq, 1), jnp.float32),      # running denom l
                pltpu.VMEM((tq, d_pad), jnp.float32),  # output accumulator
            ],
        ),
        compiler_params=pltpu.CompilerParams(
            dimension_semantics=("parallel", "arbitrary"),
            vmem_limit_bytes=32 * 1024 * 1024,
        ),
    )(q, k, v)

    return o_pad[:, :out_dim]


# ----------------------------------------------------------------------------
# Reference + test
# ----------------------------------------------------------------------------
def _reference(z, wq, bq, wk, bk, wv, bv):
    q = z @ wq.T + bq
    k = z @ wk.T + bk
    v = z @ wv.T + bv
    s = (q @ k.T) / (wq.shape[0] ** 0.5)
    a = jax.nn.softmax(s, axis=-1)
    return a @ v


def _make_inputs(key, n, in_dim, out_dim):
    kz, kwq, kbq, kwk, kbk, kwv, kbv = jax.random.split(key, 7)
    bound = 1.0 / (in_dim ** 0.5)  # PyTorch Linear init range
    z = jax.random.normal(kz, (n, in_dim), dtype=jnp.float32)
    wq = jax.random.uniform(kwq, (out_dim, in_dim), jnp.float32, -bound, bound)
    bq = jax.random.uniform(kbq, (out_dim,), jnp.float32, -bound, bound)
    wk = jax.random.uniform(kwk, (out_dim, in_dim), jnp.float32, -bound, bound)
    bk = jax.random.uniform(kbk, (out_dim,), jnp.float32, -bound, bound)
    wv = jax.random.uniform(kwv, (out_dim, in_dim), jnp.float32, -bound, bound)
    bv = jax.random.uniform(kbv, (out_dim,), jnp.float32, -bound, bound)
    return z, wq, bq, wk, bk, wv, bv


if __name__ == "__main__":
    key = jax.random.PRNGKey(0)
    k1, k2 = jax.random.split(key)

    # Case 1: lane-aligned shapes (out_dim matches the module default of 128),
    # sequence long enough to exercise a 2x2 flash grid.
    args = _make_inputs(k1, 256, 256, 128)
    out = jax.block_until_ready(self_attention(*args))
    ref = _reference(*args)
    assert out.shape == (256, 128)
    assert jnp.allclose(out, ref, atol=2e-2, rtol=2e-2), \
        float(jnp.max(jnp.abs(out - ref)))

    # Case 2: unaligned feature dims exercise the internal pad-to-128 path.
    args2 = _make_inputs(k2, 64, 96, 48)
    out2 = jax.block_until_ready(self_attention(*args2))
    ref2 = _reference(*args2)
    assert out2.shape == (64, 48)
    assert jnp.allclose(out2, ref2, atol=2e-2, rtol=2e-2), \
        float(jnp.max(jnp.abs(out2 - ref2)))

    print("KERNEL_OK")
</pallas_src>

<mosaic_0001>
module attributes {stable_mosaic.version = 11 : i64} {
  func.func @qkv_proj_kernel(%arg0: i32, %arg1: memref<128x256xbf16, #tpu.memory_space<vmem>>, %arg2: memref<256x384xbf16, #tpu.memory_space<vmem>>, %arg3: memref<1x384xf32, #tpu.memory_space<vmem>>, %arg4: memref<128x128xbf16, #tpu.memory_space<vmem>>, %arg5: memref<128x128xbf16, #tpu.memory_space<vmem>>, %arg6: memref<128x128xbf16, #tpu.memory_space<vmem>>) attributes {dimension_semantics = [#tpu.dimension_semantics<parallel>], iteration_bounds = array<i64: 2>, scalar_prefetch = 0 : i64, scratch_operands = 0 : i64, tpu.core_type = #tpu.core_type<tc>, window_params = [{transform_indices = @transform_0, window_bounds = array<i64: 128, 256>}, {pipeline_mode = #tpu.pipeline_mode<synchronous>, transform_indices = @transform_1, window_bounds = array<i64: 256, 384>}, {pipeline_mode = #tpu.pipeline_mode<synchronous>, transform_indices = @transform_2, window_bounds = array<i64: 1, 384>}, {transform_indices = @transform_3, window_bounds = array<i64: 128, 128>}, {transform_indices = @transform_4, window_bounds = array<i64: 128, 128>}, {transform_indices = @transform_5, window_bounds = array<i64: 128, 128>}]} {
    %c0 = arith.constant 0 : index
    %c0_0 = arith.constant 0 : index
    %0 = vector.load %arg1[%c0, %c0_0] : memref<128x256xbf16, #tpu.memory_space<vmem>>, vector<128x256xbf16>
    %c0_1 = arith.constant 0 : index
    %c0_2 = arith.constant 0 : index
    %1 = vector.load %arg2[%c0_1, %c0_2] : memref<256x384xbf16, #tpu.memory_space<vmem>>, vector<256x384xbf16>
    %cst = arith.constant dense<0.000000e+00> : vector<128x384xf32>
    %2 = tpu.matmul %0, %1, %cst {dimension_numbers = #tpu.dot_dimension_numbers<[1], [0], [0], [1], [0, 0, 1, 1], [], []>} : vector<128x256xbf16>, vector<256x384xbf16>, vector<128x384xf32> -> vector<128x384xf32>
    %c0_3 = arith.constant 0 : index
    %c0_4 = arith.constant 0 : index
    %3 = vector.load %arg3[%c0_3, %c0_4] : memref<1x384xf32, #tpu.memory_space<vmem>>, vector<1x384xf32>
    %4 = vector.broadcast %3 : vector<1x384xf32> to vector<128x384xf32>
    %5 = arith.addf %2, %4 : vector<128x384xf32>
    %6 = vector.extract_strided_slice %5 {offsets = [0, 0], sizes = [128, 128], strides = [1, 1]} : vector<128x384xf32> to vector<128x128xf32>
    %cst_5 = arith.constant 0.0883883461 : f32
    %7 = vector.broadcast %cst_5 : f32 to vector<128x128xf32>
    %8 = arith.mulf %6, %7 : vector<128x128xf32>
    %9 = vector.extract_strided_slice %5 {offsets = [0, 128], sizes = [128, 128], strides = [1, 1]} : vector<128x384xf32> to vector<128x128xf32>
    %10 = vector.extract_strided_slice %5 {offsets = [0, 256], sizes = [128, 128], strides = [1, 1]} : vector<128x384xf32> to vector<128x128xf32>
    %11 = arith.truncf %8 : vector<128x128xf32> to vector<128x128xbf16>
    %c0_6 = arith.constant 0 : index
    %c0_7 = arith.constant 0 : index
    %12 = vector.load %arg4[%c0_6, %c0_7] : memref<128x128xbf16, #tpu.memory_space<vmem>>, vector<128x128xbf16>
    tpu.vector_store %arg4[%c0_6, %c0_7], %11 {strides = array<i32>} : memref<128x128xbf16, #tpu.memory_space<vmem>>, vector<128x128xbf16>,
    %13 = arith.truncf %9 : vector<128x128xf32> to vector<128x128xbf16>
    %c0_8 = arith.constant 0 : index
    %c0_9 = arith.constant 0 : index
    %14 = vector.load %arg5[%c0_8, %c0_9] : memref<128x128xbf16, #tpu.memory_space<vmem>>, vector<128x128xbf16>
    tpu.vector_store %arg5[%c0_8, %c0_9], %13 {strides = array<i32>} : memref<128x128xbf16, #tpu.memory_space<vmem>>, vector<128x128xbf16>,
    %15 = arith.truncf %10 : vector<128x128xf32> to vector<128x128xbf16>
    %c0_10 = arith.constant 0 : index
    %c0_11 = arith.constant 0 : index
    %16 = vector.load %arg6[%c0_10, %c0_11] : memref<128x128xbf16, #tpu.memory_space<vmem>>, vector<128x128xbf16>
    tpu.vector_store %arg6[%c0_10, %c0_11], %15 {strides = array<i32>} : memref<128x128xbf16, #tpu.memory_space<vmem>>, vector<128x128xbf16>,
    return
  }
  func.func @transform_0(%arg0: i32) -> (i32, i32) {
    %c0_i32 = arith.constant 0 : i32
    %c0_i32_0 = arith.constant 0 : i32
    return %arg0, %c0_i32 : i32, i32
  }
  func.func @transform_1(%arg0: i32) -> (i32, i32) {
    %c0_i32 = arith.constant 0 : i32
    %c0_i32_0 = arith.constant 0 : i32
    %c0_i32_1 = arith.constant 0 : i32
    return %c0_i32, %c0_i32_0 : i32, i32
  }
  func.func @transform_2(%arg0: i32) -> (i32, i32) {
    %c0_i32 = arith.constant 0 : i32
    %c0_i32_0 = arith.constant 0 : i32
    %c0_i32_1 = arith.constant 0 : i32
    return %c0_i32, %c0_i32_0 : i32, i32
  }
  func.func @transform_3(%arg0: i32) -> (i32, i32) {
    %c0_i32 = arith.constant 0 : i32
    %c0_i32_0 = arith.constant 0 : i32
    return %arg0, %c0_i32 : i32, i32
  }
  func.func @transform_4(%arg0: i32) -> (i32, i32) {
    %c0_i32 = arith.constant 0 : i32
    %c0_i32_0 = arith.constant 0 : i32
    return %arg0, %c0_i32 : i32, i32
  }
  func.func @transform_5(%arg0: i32) -> (i32, i32) {
    %c0_i32 = arith.constant 0 : i32
    %c0_i32_0 = arith.constant 0 : i32
    return %arg0, %c0_i32 : i32, i32
  }
}

</mosaic_0001>

<bundles_post_ra>
// kernel: tpu_custom_call.1
= control target key start
LH: loop header
LB: loop body
LE: loop exit
PB: predicated region body
PF: predicated region fallthrough
CT: control target
= control target key end

     0   :  { %11 = vsyncpa [#allocation3], 0  ;;  %s2594_s0 = inlined_call_operand.hbm [shape: bf16[256,256], index: 0, kind: input, shape index: {}]   ;;  %s2595_s1 = inlined_call_operand.hbm [shape: bf16[256,384], index: 1, kind: input, shape index: {}]   ;;  %s2596_s2 = inlined_call_operand.hbm [shape: f32[1,384], index: 2, kind: input, shape index: {}]   ;;  %s2597_s3 = inlined_call_operand.hbm [shape: bf16[256,128], index: 3, kind: output, shape index: {0}]   ;;  %s2598_s4 = inlined_call_operand.hbm [shape: bf16[256,128], index: 4, kind: output, shape index: {1}]   ;;  %s2599_s5 = inlined_call_operand.hbm [shape: bf16[256,128], index: 5, kind: output, shape index: {2}]  }
   0x1   :  { %13 = vsyncpa [#allocation3 + $0x1], 0 }
   0x2   :  { %14 = vsyncpa [#allocation6], 0 }
   0x3   :  { %15 = vsyncpa [#allocation4], 0 }
   0x4   :  { %17 = vsyncpa [#allocation4 + $0x1], 0 }
   0x5   :  { %18 = vsyncpa [#allocation10], 0 }
   0x6   :  { %20 = vsyncpa [#allocation10 + $0x1], 0  ;;  %s2196_s18 = smov 0   ;;  %s2198_s19 = smov 0  }
   0x7   :  { %s2200_s20 = smov 0   ;;  %s2202_s21 = smov 0  }
   0x8 LB: > { %s2217_s22 = sadd.s32 4294967295, %s2156_s21   ;;  %s1344_s23 = sadd.s32 4294967294, %s2156_s21   ;;  %s2156_s21 = sphi %s2202_s21, %s2609_s21   ;;  %s2152_s20 = sphi %s2200_s20, %s2608_s20   ;;  %s2148_s19 = sphi %s2198_s19, %s2607_s19   ;;  %s2144_s18 = sphi %s2196_s18, %s2606_s18  }
   0x9   : > { %p46_p0 = scmp.ne.s32.totalorder %s2148_s19, %s2144_s18  ;;  %p47_p1 = scmp.eq.s32.totalorder %s2217_s22, 0 }
   0xa   : > { %p112_p2 = scmp.eq.s32.totalorder %s2217_s22, 1  ;;  %p118_p3 = scmp.eq.s32.totalorder %s1344_s23, 1 }
   0xb   : > { %p2228_p4 = por %p47_p1, %p46_p0  ;;  %p1345_p5 = scmp.ge.s32.totalorder %s2156_s21, 1 }
   0xc   : > { %p2233_p6 = por %p118_p3, %p46_p0  ;;  %p177_p7 = scmp.lt.s32.totalorder %s2156_s21, 3 }
   0xd   : > { %s188_s28 = sshll.u32 %s2595_s1, 4  ;;  %s2158_s30 = smov [#allocation5]   ;;  %s189_s28 = int_to_ptr.hbm [resolvable:$true] %s188_s28 }
   0xe   : > { %p2241_p8 = pnand %p1345_p5, %p177_p7  ;;  %s190_s6 = sshll.u32 %s2158_s30, 4  ;;  %s191_s6 = int_to_ptr.vmem [resolvable:$true] %s190_s6 }
   0xf   : > { %s203_s9 = sshll.u32 %s2596_s2, 4  ;;  %s2159_s10 = smov 192   ;;  %s204_s9 = int_to_ptr.hbm [resolvable:$true] %s203_s9 }
  0x10   : > { %p1869_p9 = pneg %p2241_p8  ;;  %s2160_s11 = smov 12  }
  0x11   : > { %s2161_s12 = smov [#allocation7]   ;;  %s2254_s14 = sadd.s32 1, %s2156_s21  }
  0x12   : > { %p1870_p10 = pnand %p1869_p9, %p47_p1  ;;  %s205_s13 = sshll.u32 %s2161_s12, 4  ;;  %s206_s13 = int_to_ptr.vmem [resolvable:$true] %s205_s13 }
  0x13   : > { %s33_s15 = sadd.s32 1, %s2152_s20  ;;  %s30_s16 = ssub.s32 %s2156_s21, %s2254_s14 }
  0x14   : > { %1872 = dma.hbm_to_vmem [thread:$0]  (!%p1870_p10), %s189_s28, 6144, %s191_s6, [#allocation6], %s2159_s10, %s2159_s10, %s2160_s11  }
  0x15   : > { %1875 = dma.hbm_to_vmem [thread:$0]  (!%p1870_p10), %s204_s9, 48, %s206_s13, [#allocation6]  }
  0x16   : > { %p40_p12 = scmp.ne.s32.totalorder %s2152_s20, %s2148_s19  ;;  %p31_p13 = scmp.eq.s32.totalorder %s30_s16, 0 }
  0x17   : > { %p41_p0 = scmp.eq.s32.totalorder %s2156_s21, 0  ;;  %p1892_p5 = scmp.lt.s32.totalorder %s2156_s21, 2 }
  0x18   : > { %p2264_p3 = por %p112_p2, %p40_p12  ;;  %s216_s27 = sand.u32 1, %s2152_s20  }
  0x19   : > { %s2270_s26 = scalar_select %p31_p13, %s2152_s20, %s33_s15  }
  0x1a   : > { %p42_p7 = por %p41_p0, %p40_p12  ;;  %s1349_s28 = sshll.u32 %s216_s27, 7 }
  0x1b   : > { %s1628_s30 = sshll.u32 %s2156_s21, 7  ;;  %s220_s9 = scalar_lea.vmem [#allocation2], %s1349_s28 }
  0x1c   : > { %s226_s8 = scalar_lea.hbm %s2594_s0, %s1628_s30  ;;  %s229_s10 = sshll.u32 %s220_s9, 4  ;;  %s230_s10 = int_to_ptr.vmem [resolvable:$true] %s229_s10 }
  0x1d   : > { %s227_s11 = sshll.u32 %s226_s8, 4  ;;  %p2277_p2 = pnand %p1892_p5, %p42_p7  ;;  %s228_s11 = int_to_ptr.hbm [resolvable:$true] %s227_s11 }
  0x1e   : > { %s217_s13 = scalar_lea.sflag [#allocation3], %s216_s27  ;;  %s1996_s15 = sshra.s32 %s228_s11, 4  ;;  %s1997_s15 = int_to_ptr.hbm [resolvable:$true] %s1996_s15 }
  0x1f   : > { %s1998_s16 = scalar_lea.hbm %s1997_s15, 128  ;;  %p2000_p10 = pneg %p2277_p2 }
  0x20   : > { %p1999_p9 = scmp.ne.s32.totalorder %s1997_s15, %s1998_s16  ;;  %s2003_s6 = scalar_lea.hbm %s2594_s0, 256 }
  0x21   : > { %p2004_p0 = scmp.lt.s32.totalorder %s1997_s15, %s2594_s0  ;;  %p2005_p5 = scmp.lt.s32.totalorder %s2003_s6, %s1998_s16 }
  0x22   : > { %p2001_p12 = pnand %p2000_p10, %p1999_p9 }
  0x23   : > { %p2006_p7 = por %p2005_p5, %p2004_p0 }
  0x24   : > { %p2002_p13 = pneg %p2001_p12 }
  0x26   : > { %p2007_p11 = pnand %p2006_p7, %p2002_p13 }
  0x28   : > { %2010 = shalt.err (!%p2007_p11)
}
  0x29   : > { %s2162_s27 = smov 128   ;;  %s2163_s9 = smov 8  }
  0x2a   : > { %1879 = dma.hbm_to_vmem [thread:$0]  (!%p2277_p2), %s228_s11, 2048, %s230_s10, %s217_s13, %s2162_s27, %s2162_s27, %s2163_s9  }
  0x2b   : > { %241 = sbr.rel (%p2241_p8) target bundleno = 423 (0x1a7), region = 32  ;;  %s2294_s30 = sand.u32 (!%p2241_p8), 1, %s2148_s19  }
  0x2c   : > { %s1354_s28 = sshll.u32 (!%p2241_p8), %s2294_s30, 7  ;;  %s244_s15 = scalar_lea.sflag (!%p2241_p8), [#allocation3], %s2294_s30 }
  0x2d   : > { %s2298_s16 = scalar_lea.vmem (!%p2241_p8), [#allocation2], %s1354_s28 }
  0x30   : > { %2127 = dma.done.wait (%p2228_p4), %s244_s15, 2048  }
  0x31   : > { %2129 = vsyncadd (%p2228_p4), %s244_s15, 4294965248 }
  0x32   : > { %2131 = dma.done.wait (%p47_p1), [#allocation6], 6192  }
  0x33   : > { %2133 = vsyncadd (%p47_p1), [#allocation6], 4294961104  ;;  %v1510_v0 = vld [vmem:[#allocation5 + $0xa8] sm:$0xf]  ;;  %v1667_v1 = vld [vmem:[#allocation5 + $0xb0] sm:$0xf0] }
  0x34   : > { %v1606_v2 = vld [vmem:[#allocation5 + $0x168] sm:$0xf]  ;;  %v1511_v3 = vor.u32 %v1667_v1, %v1510_v0  ;;  %v1691_v4 = vld [vmem:[#allocation5 + $0x170] sm:$0xf0]  ;;  %v1498_v5 = vld [vmem:[#allocation5 + $0x90] sm:$0xf] }
  0x35   : > { %v1664_v6 = vld [vmem:[#allocation5 + $0x98] sm:$0xf0]  ;;  %v1607_v7 = vor.u32 %v1691_v4, %v1606_v2  ;;  %v1594_v8 = vld [vmem:[#allocation5 + $0x150] sm:$0xf]  ;;  %v1486_v12 = vld [vmem:[#allocation5 + $0x78] sm:$0xf] }
  0x36   : > { %v1688_v9 = vld [vmem:[#allocation5 + $0x158] sm:$0xf0]  ;;  %723 = vmatpush.bf16.msra.mxu0 %v1511_v3  ;;  %1837 = vmatpush.bf16.msra.mxu2 %v1511_v3  ;;  %v1499_v10 = vor.u32 %v1664_v6, %v1498_v5  ;;  %v1661_v13 = vld [vmem:[#allocation5 + $0x80] sm:$0xf0]  ;;  %v1582_v14 = vld [vmem:[#allocation5 + $0x138] sm:$0xf] }
  0x37   : > { %1845 = vmatpush.bf16.msra.mxu3 %v1607_v7  ;;  %772 = vmatpush.bf16.msra.mxu1 %v1607_v7  ;;  %v1595_v11 = vor.u32 %v1688_v9, %v1594_v8  ;;  %v1685_v15 = vld [vmem:[#allocation5 + $0x140] sm:$0xf0]  ;;  %v1487_v16 = vor.u32 %v1661_v13, %v1486_v12  ;;  %v1474_v18 = vld [vmem:[#allocation5 + $0x60] sm:$0xf]  ;;  %v1658_v19 = vld [vmem:[#allocation5 + $0x68] sm:$0xf0] }
  0x38   : > { %v1583_v17 = vor.u32 %v1685_v15, %v1582_v14  ;;  %v1570_v20 = vld [vmem:[#allocation5 + $0x120] sm:$0xf]  ;;  %v1682_v21 = vld [vmem:[#allocation5 + $0x128] sm:$0xf0]  ;;  %v1475_v22 = vor.u32 %v1658_v19, %v1474_v18  ;;  %v1462_v24 = vld [vmem:[#allocation5 + $0x48] sm:$0xf] }
  0x39   : > { %v1571_v23 = vor.u32 %v1682_v21, %v1570_v20  ;;  %v1655_v25 = vld [vmem:[#allocation5 + $0x50] sm:$0xf0]  ;;  %v1558_v26 = vld [vmem:[#allocation5 + $0x108] sm:$0xf]  ;;  %v1450_v30 = vld [vmem:[#allocation5 + $0x30] sm:$0xf] }
  0x3a   : > { %724 = vmatpush.bf16.msra.mxu0 %v1499_v10  ;;  %1838 = vmatpush.bf16.msra.mxu2 %v1499_v10  ;;  %v1679_v27 = vld [vmem:[#allocation5 + $0x110] sm:$0xf0]  ;;  %v1463_v28 = vor.u32 %v1655_v25, %v1462_v24  ;;  %v1652_v31 = vld [vmem:[#allocation5 + $0x38] sm:$0xf0]  ;;  %v1546_v32 = vld [vmem:[#allocation5 + $0xf0] sm:$0xf] }
  0x3b   : > { %1846 = vmatpush.bf16.msra.mxu3 %v1595_v11  ;;  %773 = vmatpush.bf16.msra.mxu1 %v1595_v11  ;;  %v1559_v29 = vor.u32 %v1679_v27, %v1558_v26  ;;  %v1676_v33 = vld [vmem:[#allocation5 + $0xf8] sm:$0xf0]  ;;  %v1451_v34 = vor.u32 %v1652_v31, %v1450_v30  ;;  %v1438_v36 = vld [vmem:[#allocation5 + $0x18] sm:$0xf]  ;;  %v1649_v37 = vld [vmem:[#allocation5 + $0x20] sm:$0xf0] }
  0x3c   : > { %v1547_v35 = vor.u32 %v1676_v33, %v1546_v32  ;;  %v1534_v38 = vld [vmem:[#allocation5 + $0xd8] sm:$0xf]  ;;  %v1673_v39 = vld [vmem:[#allocation5 + $0xe0] sm:$0xf0]  ;;  %v1439_v40 = vor.u32 %v1649_v37, %v1438_v36  ;;  %v1426_v41 = vld [vmem:[#allocation5] sm:$0xf] }
  0x3d   : > { %v1535_v42 = vor.u32 %v1673_v39, %v1534_v38  ;;  %v1646_v43 = vld [vmem:[#allocation5 + $0x8] sm:$0xf0]  ;;  %v1522_v44 = vld [vmem:[#allocation5 + $0xc0] sm:$0xf]  ;;  %v1630_v47 = vld [vmem:[%s2298_s16 + $0x4] sm:$0xf0] }
  0x3e   : > { %725 = vmatpush.bf16.msra.mxu0 %v1487_v16  ;;  %1839 = vmatpush.bf16.msra.mxu2 %v1487_v16  ;;  %v1670_v45 = vld [vmem:[#allocation5 + $0xc8] sm:$0xf0]  ;;  %v1362_v46 = vld [vmem:[%s2298_s16] sm:$0xf]  ;;  %v1638_v49 = vld [vmem:[%s2298_s16 + $0x44] sm:$0xf0]  ;;  %v1427_v54 = vor.u32 %v1646_v43, %v1426_v41 }
  0x3f   : > { %1847 = vmatpush.bf16.msra.mxu3 %v1583_v17  ;;  %774 = vmatpush.bf16.msra.mxu1 %v1583_v17  ;;  %v1394_v48 = vld [vmem:[%s2298_s16 + $0x40] sm:$0xf]  ;;  %v1666_v50 = vld [vmem:[#allocation5 + $0xac] sm:$0xf]  ;;  %v1512_v51 = vld [vmem:[#allocation5 + $0xb4] sm:$0xf0]  ;;  %v1523_v58 = vor.u32 %v1670_v45, %v1522_v44  ;;  %v2316_v3 = vor.u32 %v1630_v47, %v1362_v46 }
  0x40   : > { %v1690_v52 = vld [vmem:[#allocation5 + $0x16c] sm:$0xf]  ;;  %v1608_v53 = vld [vmem:[#allocation5 + $0x174] sm:$0xf0]  ;;  %v1637_v55 = vld [vmem:[%s2298_s16 + $0x44] sm:$0xf]  ;;  %v1515_v62 = vor.u32 %v1666_v50, %v1512_v51  ;;  %v2318_v4 = vor.u32 %v1638_v49, %v1394_v48 }
  0x41   : > { %v1396_v56 = vld [vmem:[%s2298_s16 + $0x48] sm:$0xf0]  ;;  %v1629_v57 = vld [vmem:[%s2298_s16 + $0x4] sm:$0xf]  ;;  %v1518_v60 = vld [vmem:[#allocation5 + $0xb0] sm:$0xf]  ;;  %v1611_v63 = vor.u32 %v1690_v52, %v1608_v53 }
  0x42   : > { %726 = vmatpush.bf16.msra.mxu0 %v1475_v22  ;;  %1840 = vmatpush.bf16.msra.mxu2 %v1475_v22  ;;  %v1364_v59 = vld [vmem:[%s2298_s16 + $0x8] sm:$0xf0]  ;;  %v1668_v61 = vld [vmem:[#allocation5 + $0xb8] sm:$0xf0]  ;;  %v1663_v0 = vld [vmem:[#allocation5 + $0x94] sm:$0xf]  ;;  %v2320_v8 = vor.u32 %v1637_v55, %v1396_v56 }
  0x43   : > { %1848 = vmatpush.bf16.msra.mxu3 %v1571_v23  ;;  %775 = vmatpush.bf16.msra.mxu1 %v1571_v23  ;;  %v1614_v1 = vld [vmem:[#allocation5 + $0x170] sm:$0xf]  ;;  %v1692_v2 = vld [vmem:[#allocation5 + $0x178] sm:$0xf0]  ;;  %v1500_v5 = vld [vmem:[#allocation5 + $0x9c] sm:$0xf0]  ;;  %v2322_v9 = vor.u32 %v1629_v57, %v1364_v59  ;;  %v1519_v10 = vor.u32 %v1668_v61, %v1518_v60 }
  0x44   : > { %v1687_v6 = vld [vmem:[#allocation5 + $0x154] sm:$0xf]  ;;  %v1596_v7 = vld [vmem:[#allocation5 + $0x15c] sm:$0xf0]  ;;  %v1615_v11 = vor.u32 %v1692_v2, %v1614_v1  ;;  %v1506_v12 = vld [vmem:[#allocation5 + $0x98] sm:$0xf]  ;;  %v1503_v14 = vor.u32 %v1663_v0, %v1500_v5 }
  0x45   : > { %v1665_v13 = vld [vmem:[#allocation5 + $0xa0] sm:$0xf0]  ;;  %v1599_v15 = vor.u32 %v1687_v6, %v1596_v7  ;;  %v1660_v16 = vld [vmem:[#allocation5 + $0x7c] sm:$0xf]  ;;  %v1602_v17 = vld [vmem:[#allocation5 + $0x158] sm:$0xf] }
  0x46   : > { %727 = vmatpush.bf16.msra.mxu0 %v1463_v28  ;;  %1841 = vmatpush.bf16.msra.mxu2 %v1463_v28  ;;  %v1689_v18 = vld [vmem:[#allocation5 + $0x160] sm:$0xf0]  ;;  %v1488_v19 = vld [vmem:[#allocation5 + $0x84] sm:$0xf0]  ;;  %v1684_v20 = vld [vmem:[#allocation5 + $0x13c] sm:$0xf]  ;;  %v1507_v22 = vor.u32 %v1665_v13, %v1506_v12 }
  0x47   : > { %1849 = vmatpush.bf16.msra.mxu3 %v1559_v29  ;;  %776 = vmatpush.bf16.msra.mxu1 %v1559_v29  ;;  %v1584_v21 = vld [vmem:[#allocation5 + $0x144] sm:$0xf0]  ;;  %v1603_v23 = vor.u32 %v1689_v18, %v1602_v17  ;;  %v1494_v24 = vld [vmem:[#allocation5 + $0x80] sm:$0xf]  ;;  %v1662_v25 = vld [vmem:[#allocation5 + $0x88] sm:$0xf0]  ;;  %v1491_v26 = vor.u32 %v1660_v16, %v1488_v19 }
  0x48   : > { %v1587_v27 = vor.u32 %v1684_v20, %v1584_v21  ;;  %v1657_v28 = vld [vmem:[#allocation5 + $0x64] sm:$0xf]  ;;  %v1590_v29 = vld [vmem:[#allocation5 + $0x140] sm:$0xf]  ;;  %v1686_v30 = vld [vmem:[#allocation5 + $0x148] sm:$0xf0] }
  0x49   : > { %v1476_v31 = vld [vmem:[#allocation5 + $0x6c] sm:$0xf0]  ;;  %v1681_v32 = vld [vmem:[#allocation5 + $0x124] sm:$0xf]  ;;  %v1482_v36 = vld [vmem:[#allocation5 + $0x68] sm:$0xf] }
  0x4a   : > { %728 = vmatpush.bf16.msra.mxu0 %v1451_v34  ;;  %1842 = vmatpush.bf16.msra.mxu2 %v1451_v34  ;;  %v1572_v33 = vld [vmem:[#allocation5 + $0x12c] sm:$0xf0]  ;;  %v1495_v34 = vor.u32 %v1662_v25, %v1494_v24  ;;  %v1659_v37 = vld [vmem:[#allocation5 + $0x70] sm:$0xf0]  ;;  %v1632_v39 = vld [vmem:[%s2298_s16 + $0x14] sm:$0xf0] }
  0x4b   : > { %1850 = vmatpush.bf16.msra.mxu3 %v1547_v35  ;;  %777 = vmatpush.bf16.msra.mxu1 %v1547_v35  ;;  %v1591_v35 = vor.u32 %v1686_v30, %v1590_v29  ;;  %v1370_v38 = vld [vmem:[%s2298_s16 + $0x10] sm:$0xf]  ;;  %v1640_v41 = vld [vmem:[%s2298_s16 + $0x54] sm:$0xf0]  ;;  %v1575_v43 = vor.u32 %v1681_v32, %v1572_v33  ;;  %v1654_v44 = vld [vmem:[#allocation5 + $0x4c] sm:$0xf] }
  0x4c   : > { %v1578_v45 = vld [vmem:[#allocation5 + $0x128] sm:$0xf]  ;;  %v1683_v46 = vld [vmem:[#allocation5 + $0x130] sm:$0xf0]  ;;  %v1464_v47 = vld [vmem:[#allocation5 + $0x54] sm:$0xf0] }
  0x4d   : > { %v1678_v48 = vld [vmem:[#allocation5 + $0x10c] sm:$0xf]  ;;  %v1560_v49 = vld [vmem:[#allocation5 + $0x114] sm:$0xf0]  ;;  %v1639_v50 = vld [vmem:[%s2298_s16 + $0x54] sm:$0xf]  ;;  %v1579_v55 = vor.u32 %v1683_v46, %v1578_v45 }
  0x4e   : > { %729 = vmatpush.bf16.msra.mxu0 %v1439_v40  ;;  %1843 = vmatpush.bf16.msra.mxu2 %v1439_v40  ;;  %v1402_v40 = vld [vmem:[%s2298_s16 + $0x50] sm:$0xf]  ;;  %v1404_v51 = vld [vmem:[%s2298_s16 + $0x58] sm:$0xf0]  ;;  %v1631_v52 = vld [vmem:[%s2298_s16 + $0x14] sm:$0xf]  ;;  %v1563_v59 = vor.u32 %v1678_v48, %v1560_v49 }
  0x4f   : > { %1851 = vmatpush.bf16.msra.mxu3 %v1535_v42  ;;  %778 = vmatpush.bf16.msra.mxu1 %v1535_v42  ;;  %v1479_v42 = vor.u32 %v1657_v28, %v1476_v31  ;;  %v1372_v53 = vld [vmem:[%s2298_s16 + $0x18] sm:$0xf0]  ;;  %v1470_v56 = vld [vmem:[#allocation5 + $0x50] sm:$0xf]  ;;  %v1651_v60 = vld [vmem:[#allocation5 + $0x34] sm:$0xf]  ;;  %v2338_v0 = vor.u32 %v1640_v41, %v1402_v40  ;;  %v2340_v6 = vor.u32 %v1639_v50, %v1404_v51 }
  0x50   : > { %v1656_v57 = vld [vmem:[#allocation5 + $0x58] sm:$0xf0]  ;;  %v1566_v61 = vld [vmem:[#allocation5 + $0x110] sm:$0xf]  ;;  %v1452_v1 = vld [vmem:[#allocation5 + $0x3c] sm:$0xf0]  ;;  %v2342_v7 = vor.u32 %v1631_v52, %v1372_v53 }
  0x51   : > { %v1675_v2 = vld [vmem:[#allocation5 + $0xf4] sm:$0xf]  ;;  %v1548_v5 = vld [vmem:[#allocation5 + $0xfc] sm:$0xf0]  ;;  %v1455_v12 = vor.u32 %v1651_v60, %v1452_v1  ;;  %v1648_v16 = vld [vmem:[#allocation5 + $0x1c] sm:$0xf] }
  0x52   : > { %730 = vmatpush.bf16.msra.mxu0 %v1427_v54  ;;  %1844 = vmatpush.bf16.msra.mxu2 %v1427_v54  ;;  %v1483_v54 = vor.u32 %v1659_v37, %v1482_v36  ;;  %v1551_v13 = vor.u32 %v1675_v2, %v1548_v5  ;;  %v1440_v17 = vld [vmem:[#allocation5 + $0x24] sm:$0xf0]  ;;  %v1554_v18 = vld [vmem:[#allocation5 + $0xf8] sm:$0xf]  ;;  %v1677_v20 = vld [vmem:[#allocation5 + $0x100] sm:$0xf0] }
  0x53   : > { %1852 = vmatpush.bf16.msra.mxu3 %v1523_v58  ;;  %779 = vmatpush.bf16.msra.mxu1 %v1523_v58  ;;  %v1467_v58 = vor.u32 %v1654_v44, %v1464_v47  ;;  %v1672_v21 = vld [vmem:[#allocation5 + $0xdc] sm:$0xf]  ;;  %v1555_v24 = vor.u32 %v1677_v20, %v1554_v18  ;;  %v1645_v28 = vld [vmem:[#allocation5 + $0x4] sm:$0xf]  ;;  %v1428_v29 = vld [vmem:[#allocation5 + $0xc] sm:$0xf0] }
  0x54   : > { %v1542_v30 = vld [vmem:[#allocation5 + $0xe0] sm:$0xf]  ;;  %v1674_v31 = vld [vmem:[#allocation5 + $0xe8] sm:$0xf0]  ;;  %v1669_v32 = vld [vmem:[#allocation5 + $0xc4] sm:$0xf]  ;;  %v1431_v37 = vor.u32 %v1645_v28, %v1428_v29 }
  0x55   : > { %731 = vmatmul.bf16.vlgmr.msra.gmra.mxu0 %v2316_v3  ;;  %751 = vmatmul.bf16.vlgmr.msra.gmra.mxu2 %v2318_v4  ;;  %v1524_v33 = vld [vmem:[#allocation5 + $0xcc] sm:$0xf0]  ;;  %v1434_v36 = vld [vmem:[#allocation5 + $0x8] sm:$0xf]  ;;  %v1671_v41 = vld [vmem:[#allocation5 + $0xd0] sm:$0xf0] }
  0x56   : > { %821 = vmatpush.bf16.msrb.mxu2 %v1515_v62  ;;  %800 = vmatmul.bf16.vlgmr.msra.gmra.mxu3 %v2320_v8  ;;  %v1680_v62 = vld [vmem:[#allocation5 + $0x118] sm:$0xf0]  ;;  %v1530_v40 = vld [vmem:[#allocation5 + $0xc8] sm:$0xf]  ;;  %v1410_v44 = vld [vmem:[%s2298_s16 + $0x60] sm:$0xf] }
  0x57   : > { %870 = vmatpush.bf16.msrb.mxu3 %v1611_v63  ;;  %780 = vmatmul.bf16.vlgmr.msra.gmra.mxu1 %v2322_v9  ;;  %v2336_v63 = vor.u32 %v1632_v39, %v1370_v38  ;;  %v1527_v38 = vor.u32 %v1669_v32, %v1524_v33  ;;  %v1647_v39 = vld [vmem:[#allocation5 + $0x10] sm:$0xf0]  ;;  %v1642_v45 = vld [vmem:[%s2298_s16 + $0x64] sm:$0xf0]  ;;  %v1641_v46 = vld [vmem:[%s2298_s16 + $0x64] sm:$0xf]  ;;  %v1531_v51 = vor.u32 %v1671_v41, %v1530_v40 }
  0x58   : > { %919 = vmatpush.bf16.msrb.mxu0 %v1519_v10  ;;  %968 = vmatpush.bf16.msrb.mxu1 %v1615_v11  ;;  %v1471_v10 = vor.u32 %v1656_v57, %v1470_v56  ;;  %v1567_v11 = vor.u32 %v1680_v62, %v1566_v61  ;;  %v1412_v47 = vld [vmem:[%s2298_s16 + $0x68] sm:$0xf0]  ;;  %v1633_v48 = vld [vmem:[%s2298_s16 + $0x24] sm:$0xf]  ;;  %v1435_v50 = vor.u32 %v1647_v39, %v1434_v36  ;;  %v1386_v56 = vld [vmem:[%s2298_s16 + $0x30] sm:$0xf] }
  0x59   : > { %v1380_v49 = vld [vmem:[%s2298_s16 + $0x28] sm:$0xf0]  ;;  %v2356_v53 = vor.u32 %v1642_v45, %v1410_v44  ;;  %v1636_v57 = vld [vmem:[%s2298_s16 + $0x34] sm:$0xf0]  ;;  %v1643_v60 = vld [vmem:[%s2298_s16 + $0x74] sm:$0xf] }
  0x5a   : > { %822 = vmatpush.bf16.msrb.mxu2 %v1503_v14  ;;  %v1458_v14 = vld [vmem:[#allocation5 + $0x38] sm:$0xf]  ;;  %v1420_v61 = vld [vmem:[%s2298_s16 + $0x78] sm:$0xf0]  ;;  %v1635_v62 = vld [vmem:[%s2298_s16 + $0x34] sm:$0xf]  ;;  %v1387_v2 = vor.u32 %v1636_v57, %v1386_v56 }
  0x5b   : > { %871 = vmatpush.bf16.msrb.mxu3 %v1599_v15  ;;  %v1653_v15 = vld [vmem:[#allocation5 + $0x40] sm:$0xf0]  ;;  %v1388_v1 = vld [vmem:[%s2298_s16 + $0x38] sm:$0xf0]  ;;  %s2397_s24 = sshll.u32 %s2294_s30, 6  ;;  %s2441_s11 = sshll.u32 %s2217_s22, 6 }
  0x5c   : > { %920 = vmatpush.bf16.msrb.mxu0 %v1507_v22  ;;  %969 = vmatpush.bf16.msrb.mxu1 %v1603_v23  ;;  %v1459_v19 = vor.u32 %v1653_v15, %v1458_v14  ;;  %v1536_v22 = vld [vmem:[#allocation5 + $0xe4] sm:$0xf0]  ;;  %v1443_v23 = vor.u32 %v1648_v16, %v1440_v17  ;;  %s2401_s29 = scalar_lea.vmem [#allocation8], %s2397_s24  ;;  %s1151_s6 = scalar_lea.hbm %s2597_s3, %s2441_s11 }
  0x5d   : > { %v1539_v25 = vor.u32 %v1672_v21, %v1536_v22  ;;  %s1152_s10 = sshll.u32 %s2401_s29, 4  ;;  %s1154_s7 = sshll.u32 %s1151_s6, 4  ;;  %s2443_s10 = int_to_ptr.vmem [resolvable:$true] %s1152_s10  ;;  %s1155_s7 = int_to_ptr.hbm [resolvable:$true] %s1154_s7 }
  0x5e   : > { %823 = vmatpush.bf16.msrb.mxu2 %v1491_v26  ;;  %v1446_v26 = vld [vmem:[#allocation5 + $0x20] sm:$0xf]  ;;  %s1130_s8 = scalar_lea.sflag [#allocation4], %s2294_s30  ;;  %s2040_s27 = sshra.s32 %s1155_s7, 4  ;;  %s2041_s27 = int_to_ptr.hbm [resolvable:$true] %s2040_s27 }
  0x5f   : > { %872 = vmatpush.bf16.msrb.mxu3 %v1587_v27  ;;  %v1650_v27 = vld [vmem:[#allocation5 + $0x28] sm:$0xf0]  ;;  %s2042_s9 = scalar_lea.hbm %s2041_s27, 64  ;;  %p2047_p11 = scmp.lt.s32.totalorder %s2041_s27, %s2597_s3 }
  0x60   : > { %921 = vmatpush.bf16.msrb.mxu0 %v1495_v34  ;;  %970 = vmatpush.bf16.msrb.mxu1 %v1591_v35  ;;  %v1447_v34 = vor.u32 %v1650_v27, %v1446_v26  ;;  %v1543_v35 = vor.u32 %v1674_v31, %v1542_v30  ;;  %p2043_p1 = scmp.ne.s32.totalorder %s2041_s27, %s2042_s9 }
  0x62   : > { %824 = vmatpush.bf16.msrb.mxu2 %v1479_v42  ;;  %v1378_v42 = vld [vmem:[%s2298_s16 + $0x20] sm:$0xf]  ;;  %p2044_p4 = pnand %p2043_p1, %p2264_p3 }
  0x63   : > { %873 = vmatpush.bf16.msrb.mxu3 %v1575_v43  ;;  %v1634_v43 = vld [vmem:[%s2298_s16 + $0x24] sm:$0xf0] }
  0x64   : > { %922 = vmatpush.bf16.msrb.mxu0 %v1483_v54  ;;  %971 = vmatpush.bf16.msrb.mxu1 %v1579_v55  ;;  %v1379_v52 = vor.u32 %v1634_v43, %v1378_v42  ;;  %v2358_v54 = vor.u32 %v1641_v46, %v1412_v47  ;;  %v1383_v55 = vor.u32 %v1633_v48, %v1380_v49  ;;  %p2045_p8 = pneg %p2044_p4 }
  0x65   : > { %736 = vmatmul.bf16.gmra.mxu0 %v2336_v63  ;;  %756 = vmatmul.bf16.gmra.mxu2 %v2338_v0 }
  0x66   : > { %825 = vmatpush.bf16.msrb.mxu2 %v1467_v58  ;;  %805 = vmatmul.bf16.gmra.mxu3 %v2340_v6  ;;  %v1418_v58 = vld [vmem:[%s2298_s16 + $0x70] sm:$0xf] }
  0x67   : > { %874 = vmatpush.bf16.msrb.mxu3 %v1563_v59  ;;  %785 = vmatmul.bf16.gmra.mxu1 %v2342_v7  ;;  %v1644_v59 = vld [vmem:[%s2298_s16 + $0x74] sm:$0xf0]  ;;  %s2046_s16 = scalar_lea.hbm %s2597_s3, 128 }
  0x68   : > { %923 = vmatpush.bf16.msrb.mxu0 %v1471_v10  ;;  %972 = vmatpush.bf16.msrb.mxu1 %v1567_v11  ;;  %v2370_v5 = vor.u32 %v1644_v59, %v1418_v58  ;;  %v2372_v10 = vor.u32 %v1643_v60, %v1420_v61  ;;  %v1391_v11 = vor.u32 %v1635_v62, %v1388_v1  ;;  %p2048_p2 = scmp.lt.s32.totalorder %s2046_s16, %s2042_s9 }
  0x6a   : > { %826 = vmatpush.bf16.msrb.mxu2 %v1455_v12  ;;  %p2049_p9 = por %p2048_p2, %p2047_p11 }
  0x6b   : > { %875 = vmatpush.bf16.msrb.mxu3 %v1551_v13 }
  0x6c   : > { %924 = vmatpush.bf16.msrb.mxu0 %v1459_v19  ;;  %973 = vmatpush.bf16.msrb.mxu1 %v1555_v24  ;;  %p2050_p10 = pnand %p2049_p9, %p2045_p8 }
  0x6e   : > { %827 = vmatpush.bf16.msrb.mxu2 %v1443_v23 }
  0x6f   : > { %876 = vmatpush.bf16.msrb.mxu3 %v1539_v25 }
  0x70   : > { %925 = vmatpush.bf16.msrb.mxu0 %v1447_v34  ;;  %974 = vmatpush.bf16.msrb.mxu1 %v1543_v35 }
  0x72   : > { %828 = vmatpush.bf16.msrb.mxu2 %v1431_v37 }
  0x73   : > { %877 = vmatpush.bf16.msrb.mxu3 %v1527_v38 }
  0x74   : > { %926 = vmatpush.bf16.msrb.mxu0 %v1435_v50  ;;  %975 = vmatpush.bf16.msrb.mxu1 %v1531_v51 }
  0x75   : > { %741 = vmatmul.bf16.gmra.mxu0 %v1379_v52  ;;  %761 = vmatmul.bf16.gmra.mxu2 %v2356_v53 }
  0x76   : > { %810 = vmatmul.bf16.gmra.mxu3 %v2358_v54 }
  0x77   : > { %790 = vmatmul.bf16.gmra.mxu1 %v1383_v55 }
  0x85   : > { %746 = vmatmul.bf16.gmra.mxu0 %v1387_v2  ;;  %766 = vmatmul.bf16.gmra.mxu2 %v2370_v5 }
  0x86   : > { %815 = vmatmul.bf16.gmra.mxu3 %v2372_v10 }
  0x87   : > { %795 = vmatmul.bf16.gmra.mxu1 %v1391_v11 }
  0x95   : > { %829 = vmatmul.bf16.vlgmr.msrb.gmra.mxu2 %v2316_v3  ;;  %927 = vmatmul.bf16.vlgmr.msrb.gmra.mxu0 %v2316_v3  ;;  %v2384_v3 = vld [vmem:[#allocation7] sm:$0x7] }
  0x96   : > { %878 = vmatmul.bf16.vlgmr.msrb.gmra.mxu3 %v2322_v9 }
  0x97   : > { %976 = vmatmul.bf16.vlgmr.msrb.gmra.mxu1 %v2322_v9  ;;  %v2387_v9 = vperm.slane %v2384_v3, 0 }
  0xa5   : > { %834 = vmatmul.bf16.gmra.mxu2 %v2336_v63  ;;  %932 = vmatmul.bf16.gmra.mxu0 %v2336_v63 }
  0xa6   : > { %883 = vmatmul.bf16.gmra.mxu3 %v2342_v7 }
  0xa7   : > { %981 = vmatmul.bf16.gmra.mxu1 %v2342_v7 }
  0xb5   : > { %839 = vmatmul.bf16.gmra.mxu2 %v1379_v52  ;;  %937 = vmatmul.bf16.gmra.mxu0 %v1379_v52 }
  0xb6   : > { %888 = vmatmul.bf16.gmra.mxu3 %v1383_v55 }
  0xb7   : > { %986 = vmatmul.bf16.gmra.mxu1 %v1383_v55 }
  0xc5   : > { %844 = vmatmul.bf16.gmra.mxu2 %v1387_v2  ;;  %942 = vmatmul.bf16.gmra.mxu0 %v1387_v2 }
  0xc6   : > { %893 = vmatmul.bf16.gmra.mxu3 %v1391_v11 }
  0xc7   : > { %991 = vmatmul.bf16.gmra.mxu1 %v1391_v11 }
  0xd2   : > { %v732_v12 = vpop.f32.mrf.mxu0 }
  0xd3   : > { %v733_v13 = vadd.f32 %v732_v12, %v2387_v9 }
  0xd4   : > { %v781_v63 = vpop.f32.mrf.mxu1 }
  0xd5   : > { %849 = vmatmul.bf16.gmra.mxu2 %v2318_v4  ;;  %947 = vmatmul.bf16.gmra.mxu0 %v2318_v4  ;;  %v782_v14 = vadd.f32 %v781_v63, %v733_v13 }
  0xd6   : > { %898 = vmatmul.bf16.gmra.mxu3 %v2320_v8 }
  0xd7   : > { %996 = vmatmul.bf16.gmra.mxu1 %v2320_v8  ;;  %v1017_v19 = vmul.f32 0.088388346, %v782_v14 }
  0xd8   : > { %v752_v7 = vpop.f32.mrf.mxu2 }
  0xd9   : > { %v801_v15 = vpop.f32.mrf.mxu3  ;;  %v753_v20 = vadd.f32 %v752_v7, %v2387_v9 }
  0xda   : > { %v734_v16 = vpop.f32.mrf.mxu0 }
  0xdb   : > { %v735_v17 = vadd.f32 %v734_v16, %v2387_v9  ;;  %v802_v23 = vadd.f32 %v801_v15, %v753_v20 }
  0xdc   : > { %v783_v18 = vpop.f32.mrf.mxu1 }
  0xdd   : > { %v784_v21 = vadd.f32 %v783_v18, %v735_v17  ;;  %v1025_v29 = vmul.f32 0.088388346, %v802_v23 }
  0xdf   : > { %v1018_v22 = vmul.f32 0.088388346, %v784_v21 }
  0xe0   : > { %v754_v4 = vpop.f32.mrf.mxu2 }
  0xe1   : > { %v1699_v24 = vpack.c.bf16 %v1018_v22, %v1017_v19  ;;  %v755_v8 = vadd.f32 %v754_v4, %v2387_v9  ;;  %v803_v25 = vpop.f32.mrf.mxu3 }
  0xe2   : > { %v737_v26 = vpop.f32.mrf.mxu0 }
  0xe3   : > { %1700 = vst [vmem:[%s2401_s29] sm:$0xff] %v1699_v24   ;;  %v804_v27 = vadd.f32 %v803_v25, %v755_v8  ;;  %v738_v31 = vadd.f32 %v737_v26, %v2387_v9 }
  0xe4   : > { %v786_v28 = vpop.f32.mrf.mxu1 }
  0xe5   : > { %v1026_v30 = vmul.f32 0.088388346, %v804_v27  ;;  %854 = vmatmul.bf16.gmra.mxu2 %v2338_v0  ;;  %952 = vmatmul.bf16.gmra.mxu0 %v2338_v0  ;;  %v787_v34 = vadd.f32 %v786_v28, %v738_v31 }
  0xe6   : > { %903 = vmatmul.bf16.gmra.mxu3 %v2340_v6 }
  0xe7   : > { %1001 = vmatmul.bf16.gmra.mxu1 %v2340_v6  ;;  %v1719_v32 = vpack.c.bf16 %v1026_v30, %v1025_v29  ;;  %v1019_v39 = vmul.f32 0.088388346, %v787_v34 }
  0xe8   : > { %v757_v33 = vpop.f32.mrf.mxu2 }
  0xe9   : > { %1819 = vst [vmem:[%s2401_s29 + $0x20] sm:$0xff] %v1719_v32   ;;  %v806_v35 = vpop.f32.mrf.mxu3  ;;  %v758_v40 = vadd.f32 %v757_v33, %v2387_v9  ;;  %v2435_v32 = vperm.slane %v2384_v3, 2 }
  0xea   : > { %v739_v36 = vpop.f32.mrf.mxu0 }
  0xeb   : > { %v740_v37 = vadd.f32 %v739_v36, %v2387_v9  ;;  %v807_v43 = vadd.f32 %v806_v35, %v758_v40 }
  0xec   : > { %v788_v38 = vpop.f32.mrf.mxu1 }
  0xed   : > { %v789_v41 = vadd.f32 %v788_v38, %v740_v37  ;;  %v1027_v49 = vmul.f32 0.088388346, %v807_v43 }
  0xef   : > { %v1020_v42 = vmul.f32 0.088388346, %v789_v41  ;;  %v2446_v41 = vperm.slane %v2384_v3, 1 }
  0xf0   : > { %v759_v0 = vpop.f32.mrf.mxu2 }
  0xf1   : > { %v1704_v44 = vpack.c.bf16 %v1020_v42, %v1019_v39  ;;  %v760_v6 = vadd.f32 %v759_v0, %v2387_v9  ;;  %v808_v45 = vpop.f32.mrf.mxu3 }
  0xf2   : > { %v742_v46 = vpop.f32.mrf.mxu0 }
  0xf3   : > { %1816 = vst [vmem:[%s2401_s29 + $0x8] sm:$0xff] %v1704_v44   ;;  %v809_v47 = vadd.f32 %v808_v45, %v760_v6  ;;  %v743_v51 = vadd.f32 %v742_v46, %v2387_v9 }
  0xf4   : > { %v791_v48 = vpop.f32.mrf.mxu1 }
  0xf5   : > { %v1028_v50 = vmul.f32 0.088388346, %v809_v47  ;;  %859 = vmatmul.bf16.gmra.mxu2 %v2356_v53  ;;  %957 = vmatmul.bf16.gmra.mxu0 %v2356_v53  ;;  %v792_v56 = vadd.f32 %v791_v48, %v743_v51 }
  0xf6   : > { %908 = vmatmul.bf16.gmra.mxu3 %v2358_v54 }
  0xf7   : > { %1006 = vmatmul.bf16.gmra.mxu1 %v2358_v54  ;;  %v1724_v52 = vpack.c.bf16 %v1028_v50, %v1027_v49  ;;  %v1021_v61 = vmul.f32 0.088388346, %v792_v56 }
  0xf8   : > { %v762_v55 = vpop.f32.mrf.mxu2 }
  0xf9   : > { %1820 = vst [vmem:[%s2401_s29 + $0x28] sm:$0xff] %v1724_v52   ;;  %v811_v57 = vpop.f32.mrf.mxu3  ;;  %v763_v62 = vadd.f32 %v762_v55, %v2387_v9 }
  0xfa   : > { %v744_v58 = vpop.f32.mrf.mxu0 }
  0xfb   : > { %v745_v59 = vadd.f32 %v744_v58, %v2387_v9  ;;  %v812_v11 = vadd.f32 %v811_v57, %v763_v62 }
  0xfc   : > { %v793_v60 = vpop.f32.mrf.mxu1 }
  0xfd   : > { %v794_v1 = vadd.f32 %v793_v60, %v745_v59  ;;  %v1029_v15 = vmul.f32 0.088388346, %v812_v11 }
  0xff   : > { %v1022_v2 = vmul.f32 0.088388346, %v794_v1 }
 0x100   : > { %v764_v53 = vpop.f32.mrf.mxu2 }
 0x101   : > { %v1709_v12 = vpack.c.bf16 %v1022_v2, %v1021_v61  ;;  %v765_v54 = vadd.f32 %v764_v53, %v2387_v9  ;;  %v813_v63 = vpop.f32.mrf.mxu3 }
 0x102   : > { %v747_v13 = vpop.f32.mrf.mxu0 }
 0x103   : > { %1817 = vst [vmem:[%s2401_s29 + $0x10] sm:$0xff] %v1709_v12   ;;  %v814_v7 = vadd.f32 %v813_v63, %v765_v54  ;;  %v748_v17 = vadd.f32 %v747_v13, %v2387_v9 }
 0x104   : > { %v796_v14 = vpop.f32.mrf.mxu1 }
 0x105   : > { %v1030_v16 = vmul.f32 0.088388346, %v814_v7  ;;  %864 = vmatmul.bf16.gmra.mxu2 %v2370_v5  ;;  %962 = vmatmul.bf16.gmra.mxu0 %v2370_v5  ;;  %v797_v20 = vadd.f32 %v796_v14, %v748_v17 }
 0x106   : > { %913 = vmatmul.bf16.gmra.mxu3 %v2372_v10 }
 0x107   : > { %1011 = vmatmul.bf16.gmra.mxu1 %v2372_v10  ;;  %v1729_v18 = vpack.c.bf16 %v1030_v16, %v1029_v15  ;;  %v1023_v24 = vmul.f32 0.088388346, %v797_v20 }
 0x108   : > { %v767_v19 = vpop.f32.mrf.mxu2 }
 0x109   : > { %1821 = vst [vmem:[%s2401_s29 + $0x30] sm:$0xff] %v1729_v18   ;;  %v816_v21 = vpop.f32.mrf.mxu3  ;;  %v768_v8 = vadd.f32 %v767_v19, %v2387_v9 }
 0x10a   : > { %v749_v22 = vpop.f32.mrf.mxu0 }
 0x10b   : > { %v750_v4 = vadd.f32 %v749_v22, %v2387_v9  ;;  %v817_v27 = vadd.f32 %v816_v21, %v768_v8 }
 0x10c   : > { %v798_v23 = vpop.f32.mrf.mxu1 }
 0x10d   : > { %v799_v25 = vadd.f32 %v798_v23, %v750_v4  ;;  %v1031_v34 = vmul.f32 0.088388346, %v817_v27 }
 0x10f   : > { %v1024_v5 = vmul.f32 0.088388346, %v799_v25 }
 0x110   : > { %v769_v26 = vpop.f32.mrf.mxu2 }
 0x111   : > { %v1714_v10 = vpack.c.bf16 %v1024_v5, %v1023_v24  ;;  %v770_v28 = vadd.f32 %v769_v26, %v2387_v9  ;;  %v818_v29 = vpop.f32.mrf.mxu3 }
 0x112   : > { %v928_v30 = vpop.f32.mrf.mxu0 }
 0x113   : > { %1818 = vst [vmem:[%s2401_s29 + $0x18] sm:$0xff] %v1714_v10   ;;  %v819_v31 = vadd.f32 %v818_v29, %v770_v28  ;;  %v929_v37 = vadd.f32 %v928_v30, %v2435_v32 }
 0x114   : > { %v977_v33 = vpop.f32.mrf.mxu1 }
 0x115   : > { %v1032_v35 = vmul.f32 0.088388346, %v819_v31  ;;  %v978_v40 = vadd.f32 %v977_v33, %v929_v37 }
 0x117   : > { %v1734_v36 = vpack.c.bf16 %v1032_v35, %v1031_v34 }
 0x118   : > { %v830_v38 = vpop.f32.mrf.mxu2 }
 0x119   : > { %1822 = vst [vmem:[%s2401_s29 + $0x38] sm:$0xff] %v1734_v36   ;;  %v879_v39 = vpop.f32.mrf.mxu3  ;;  %v831_v44 = vadd.f32 %v830_v38, %v2446_v41 }
 0x11a   : > { %v930_v9 = vpop.f32.mrf.mxu0 }
 0x11b   : > { %v931_v42 = vadd.f32 %v930_v9, %v2435_v32 }
 0x11c   : > { %v979_v0 = vpop.f32.mrf.mxu1 }
 0x11d   : > { %v980_v43 = vadd.f32 %v979_v0, %v931_v42 }
 0x11f   : > { %v1779_v6 = vpack.c.bf16 %v980_v43, %v978_v40 }
 0x120   : > { %2053 = shalt.err (!%p2050_p10)
}
 0x121   : > { %s2164_s30 = smov 64   ;;  %s2165_s13 = smov 4   ;;  %v832_v3 = vpop.f32.mrf.mxu2  ;;  %v881_v46 = vpop.f32.mrf.mxu3  ;;  %v880_v48 = vadd.f32 %v879_v39, %v831_v44 }
 0x122   : > { %1863 = dma.vmem_to_hbm [thread:$0]  (%p2264_p3), %s2443_s10, 1024, %s1155_s7, %s1130_s8, %s2164_s30, %s2164_s30, %s2165_s13   ;;  %v833_v45 = vadd.f32 %v832_v3, %v2446_v41  ;;  %v933_v47 = vpop.f32.mrf.mxu0 }
 0x123   : > { %s2470_s6 = scalar_lea.vmem [#allocation11], %s2397_s24  ;;  %s2475_s27 = scalar_lea.vmem [#allocation9], %s2397_s24  ;;  %v934_v52 = vadd.f32 %v933_v47, %v2435_v32 }
 0x124   : > { %1780 = vst [vmem:[%s2470_s6] sm:$0xff] %v1779_v6   ;;  %v882_v49 = vadd.f32 %v881_v46, %v833_v45  ;;  %v982_v50 = vpop.f32.mrf.mxu1  ;;  %s1168_s7 = scalar_lea.hbm %s2598_s4, %s2441_s11  ;;  %s1185_s28 = scalar_lea.hbm %s2599_s5, %s2441_s11 }
 0x125   : > { %v983_v58 = vadd.f32 %v982_v50, %v934_v52  ;;  %s1169_s15 = sshll.u32 %s2475_s27, 4  ;;  %s1134_s16 = sand.u32 1, %s2217_s22   ;;  %s1170_s15 = int_to_ptr.vmem [resolvable:$true] %s1169_s15 }
 0x126   : > { %v1739_v51 = vpack.c.bf16 %v882_v49, %v880_v48  ;;  %s2529_s29 = sshll.u32 %s1168_s7, 4  ;;  %s1186_s12 = sshll.u32 %s2470_s6, 4  ;;  %s1172_s29 = int_to_ptr.hbm [resolvable:$true] %s2529_s29  ;;  %s2535_s12 = int_to_ptr.vmem [resolvable:$true] %s1186_s12 }
 0x127   : > { %s2532_s24 = sshll.u32 %s1185_s28, 4  ;;  %s2539_s11 = scalar_lea.sflag [#allocation10], %s1134_s16  ;;  %s1189_s24 = int_to_ptr.hbm [resolvable:$true] %s2532_s24 }
 0x128   : > { %1740 = vst [vmem:[%s2475_s27] sm:$0xff] %v1739_v51   ;;  %s2068_s22 = sshra.s32 %s1172_s29, 4  ;;  %s2074_s8 = scalar_lea.hbm %s2598_s4, 128  ;;  %s2069_s22 = int_to_ptr.hbm [resolvable:$true] %s2068_s22 }
 0x129   : > { %v835_v55 = vpop.f32.mrf.mxu2  ;;  %v884_v56 = vpop.f32.mrf.mxu3  ;;  %s2070_s10 = scalar_lea.hbm %s2069_s22, 64  ;;  %p2075_p5 = scmp.lt.s32.totalorder %s2069_s22, %s2598_s4 }
 0x12a   : > { %v935_v57 = vpop.f32.mrf.mxu0  ;;  %v836_v62 = vadd.f32 %v835_v55, %v2446_v41  ;;  %p2071_p12 = scmp.ne.s32.totalorder %s2069_s22, %s2070_s10  ;;  %p2076_p7 = scmp.lt.s32.totalorder %s2074_s8, %s2070_s10 }
 0x12b   : > { %v936_v59 = vadd.f32 %v935_v57, %v2435_v32 }
 0x12c   : > { %v984_v60 = vpop.f32.mrf.mxu1  ;;  %v885_v54 = vadd.f32 %v884_v56, %v836_v62  ;;  %p2072_p13 = pnand %p2071_p12, %p2264_p3  ;;  %p2077_p1 = por %p2076_p7, %p2075_p5 }
 0x12d   : > { %v985_v61 = vadd.f32 %v984_v60, %v936_v59 }
 0x12e   : > { %p2073_p0 = pneg %p2072_p13 }
 0x12f   : > { %v1784_v1 = vpack.c.bf16 %v985_v61, %v983_v58 }
 0x130   : > { %p2078_p4 = pnand %p2077_p1, %p2073_p0 }
 0x131   : > { %v837_v2 = vpop.f32.mrf.mxu2  ;;  %1830 = vst [vmem:[%s2470_s6 + $0x8] sm:$0xff] %v1784_v1   ;;  %v886_v11 = vpop.f32.mrf.mxu3 }
 0x132   : > { %v838_v53 = vadd.f32 %v837_v2, %v2446_v41  ;;  %v938_v12 = vpop.f32.mrf.mxu0 }
 0x133   : > { %v939_v14 = vadd.f32 %v938_v12, %v2435_v32 }
 0x134   : > { %v887_v63 = vadd.f32 %v886_v11, %v838_v53  ;;  %v987_v13 = vpop.f32.mrf.mxu1 }
 0x135   : > { %v988_v18 = vadd.f32 %v987_v13, %v939_v14 }
 0x136   : > { %v1744_v7 = vpack.c.bf16 %v887_v63, %v885_v54 }
 0x138   : > { %1823 = vst [vmem:[%s2475_s27 + $0x8] sm:$0xff] %v1744_v7  }
 0x139   : > { %v840_v15 = vpop.f32.mrf.mxu2  ;;  %v889_v16 = vpop.f32.mrf.mxu3 }
 0x13a   : > { %v940_v17 = vpop.f32.mrf.mxu0  ;;  %v841_v22 = vadd.f32 %v840_v15, %v2446_v41 }
 0x13b   : > { %v941_v19 = vadd.f32 %v940_v17, %v2435_v32 }
 0x13c   : > { %v989_v20 = vpop.f32.mrf.mxu1  ;;  %v890_v5 = vadd.f32 %v889_v16, %v841_v22 }
 0x13d   : > { %v990_v21 = vadd.f32 %v989_v20, %v941_v19 }
 0x13f   : > { %v1789_v4 = vpack.c.bf16 %v990_v21, %v988_v18 }
 0x141   : > { %v842_v23 = vpop.f32.mrf.mxu2  ;;  %1831 = vst [vmem:[%s2470_s6 + $0x10] sm:$0xff] %v1789_v4   ;;  %v891_v8 = vpop.f32.mrf.mxu3 }
 0x142   : > { %v843_v24 = vadd.f32 %v842_v23, %v2446_v41  ;;  %v943_v25 = vpop.f32.mrf.mxu0 }
 0x143   : > { %v944_v28 = vadd.f32 %v943_v25, %v2435_v32 }
 0x144   : > { %v892_v26 = vadd.f32 %v891_v8, %v843_v24  ;;  %v992_v27 = vpop.f32.mrf.mxu1 }
 0x145   : > { %v993_v33 = vadd.f32 %v992_v27, %v944_v28 }
 0x146   : > { %v1749_v10 = vpack.c.bf16 %v892_v26, %v890_v5 }
 0x148   : > { %1824 = vst [vmem:[%s2475_s27 + $0x10] sm:$0xff] %v1749_v10  }
 0x149   : > { %v845_v29 = vpop.f32.mrf.mxu2  ;;  %v894_v30 = vpop.f32.mrf.mxu3 }
 0x14a   : > { %v945_v31 = vpop.f32.mrf.mxu0  ;;  %v846_v37 = vadd.f32 %v845_v29, %v2446_v41 }
 0x14b   : > { %v946_v34 = vadd.f32 %v945_v31, %v2435_v32 }
 0x14c   : > { %v994_v35 = vpop.f32.mrf.mxu1  ;;  %v895_v0 = vadd.f32 %v894_v30, %v846_v37 }
 0x14d   : > { %v995_v36 = vadd.f32 %v994_v35, %v946_v34 }
 0x14f   : > { %v1794_v38 = vpack.c.bf16 %v995_v36, %v993_v33 }
 0x151   : > { %v847_v39 = vpop.f32.mrf.mxu2  ;;  %1832 = vst [vmem:[%s2470_s6 + $0x18] sm:$0xff] %v1794_v38   ;;  %v896_v40 = vpop.f32.mrf.mxu3 }
 0x152   : > { %v848_v9 = vadd.f32 %v847_v39, %v2446_v41  ;;  %v948_v42 = vpop.f32.mrf.mxu0 }
 0x153   : > { %v949_v3 = vadd.f32 %v948_v42, %v2435_v32 }
 0x154   : > { %v897_v43 = vadd.f32 %v896_v40, %v848_v9  ;;  %v997_v44 = vpop.f32.mrf.mxu1 }
 0x155   : > { %v998_v48 = vadd.f32 %v997_v44, %v949_v3 }
 0x156   : > { %v1754_v6 = vpack.c.bf16 %v897_v43, %v895_v0 }
 0x158   : > { %1825 = vst [vmem:[%s2475_s27 + $0x18] sm:$0xff] %v1754_v6  }
 0x159   : > { %v850_v45 = vpop.f32.mrf.mxu2  ;;  %v899_v46 = vpop.f32.mrf.mxu3 }
 0x15a   : > { %v950_v47 = vpop.f32.mrf.mxu0  ;;  %v851_v52 = vadd.f32 %v850_v45, %v2446_v41 }
 0x15b   : > { %v951_v49 = vadd.f32 %v950_v47, %v2435_v32 }
 0x15c   : > { %v999_v50 = vpop.f32.mrf.mxu1  ;;  %v900_v60 = vadd.f32 %v899_v46, %v851_v52 }
 0x15d   : > { %v1000_v51 = vadd.f32 %v999_v50, %v951_v49 }
 0x15f   : > { %v1799_v55 = vpack.c.bf16 %v1000_v51, %v998_v48 }
 0x161   : > { %v852_v56 = vpop.f32.mrf.mxu2  ;;  %1833 = vst [vmem:[%s2470_s6 + $0x20] sm:$0xff] %v1799_v55   ;;  %v901_v58 = vpop.f32.mrf.mxu3 }
 0x162   : > { %v853_v57 = vadd.f32 %v852_v56, %v2446_v41  ;;  %v953_v59 = vpop.f32.mrf.mxu0 }
 0x163   : > { %v954_v2 = vadd.f32 %v953_v59, %v2435_v32 }
 0x164   : > { %v902_v61 = vadd.f32 %v901_v58, %v853_v57  ;;  %v1002_v62 = vpop.f32.mrf.mxu1 }
 0x165   : > { %v1003_v54 = vadd.f32 %v1002_v62, %v954_v2 }
 0x166   : > { %v1759_v1 = vpack.c.bf16 %v902_v61, %v900_v60 }
 0x168   : > { %1826 = vst [vmem:[%s2475_s27 + $0x20] sm:$0xff] %v1759_v1  }
 0x169   : > { %v855_v53 = vpop.f32.mrf.mxu2  ;;  %v904_v11 = vpop.f32.mrf.mxu3 }
 0x16a   : > { %v955_v12 = vpop.f32.mrf.mxu0  ;;  %v856_v14 = vadd.f32 %v855_v53, %v2446_v41 }
 0x16b   : > { %v956_v63 = vadd.f32 %v955_v12, %v2435_v32 }
 0x16c   : > { %v1004_v13 = vpop.f32.mrf.mxu1  ;;  %v905_v20 = vadd.f32 %v904_v11, %v856_v14 }
 0x16d   : > { %v1005_v7 = vadd.f32 %v1004_v13, %v956_v63 }
 0x16f   : > { %v1804_v15 = vpack.c.bf16 %v1005_v7, %v1003_v54 }
 0x171   : > { %v857_v16 = vpop.f32.mrf.mxu2  ;;  %1834 = vst [vmem:[%s2470_s6 + $0x28] sm:$0xff] %v1804_v15   ;;  %v906_v18 = vpop.f32.mrf.mxu3 }
 0x172   : > { %v858_v17 = vadd.f32 %v857_v16, %v2446_v41  ;;  %v958_v19 = vpop.f32.mrf.mxu0 }
 0x173   : > { %v959_v23 = vadd.f32 %v958_v19, %v2435_v32 }
 0x174   : > { %v907_v21 = vadd.f32 %v906_v18, %v858_v17  ;;  %v1007_v22 = vpop.f32.mrf.mxu1 }
 0x175   : > { %v1008_v5 = vadd.f32 %v1007_v22, %v959_v23 }
 0x176   : > { %v1764_v4 = vpack.c.bf16 %v907_v21, %v905_v20 }
 0x178   : > { %1827 = vst [vmem:[%s2475_s27 + $0x28] sm:$0xff] %v1764_v4  }
 0x179   : > { %v860_v24 = vpop.f32.mrf.mxu2  ;;  %v909_v8 = vpop.f32.mrf.mxu3 }
 0x17a   : > { %v960_v25 = vpop.f32.mrf.mxu0  ;;  %v861_v28 = vadd.f32 %v860_v24, %v2446_v41 }
 0x17b   : > { %v961_v26 = vadd.f32 %v960_v25, %v2435_v32 }
 0x17c   : > { %v1009_v27 = vpop.f32.mrf.mxu1  ;;  %v910_v35 = vadd.f32 %v909_v8, %v861_v28 }
 0x17d   : > { %v1010_v10 = vadd.f32 %v1009_v27, %v961_v26 }
 0x17f   : > { %v1809_v29 = vpack.c.bf16 %v1010_v10, %v1008_v5 }
 0x181   : > { %v862_v30 = vpop.f32.mrf.mxu2  ;;  %1835 = vst [vmem:[%s2470_s6 + $0x30] sm:$0xff] %v1809_v29   ;;  %v911_v33 = vpop.f32.mrf.mxu3 }
 0x182   : > { %v863_v31 = vadd.f32 %v862_v30, %v2446_v41  ;;  %v963_v34 = vpop.f32.mrf.mxu0 }
 0x183   : > { %v964_v39 = vadd.f32 %v963_v34, %v2435_v32 }
 0x184   : > { %v912_v36 = vadd.f32 %v911_v33, %v863_v31  ;;  %v1012_v37 = vpop.f32.mrf.mxu1 }
 0x185   : > { %v1013_v0 = vadd.f32 %v1012_v37, %v964_v39 }
 0x186   : > { %v1769_v38 = vpack.c.bf16 %v912_v36, %v910_v35 }
 0x188   : > { %1828 = vst [vmem:[%s2475_s27 + $0x30] sm:$0xff] %v1769_v38  }
 0x189   : > { %v865_v9 = vpop.f32.mrf.mxu2  ;;  %v914_v40 = vpop.f32.mrf.mxu3 }
 0x18a   : > { %v965_v42 = vpop.f32.mrf.mxu0  ;;  %v866_v3 = vadd.f32 %v865_v9, %v2446_v41 }
 0x18b   : > { %v966_v43 = vadd.f32 %v965_v42, %v2435_v32 }
 0x18c   : > { %v1014_v44 = vpop.f32.mrf.mxu1  ;;  %v915_v48 = vadd.f32 %v914_v40, %v866_v3 }
 0x18d   : > { %v1015_v6 = vadd.f32 %v1014_v44, %v966_v43 }
 0x18f   : > { %v1814_v45 = vpack.c.bf16 %v1015_v6, %v1013_v0 }
 0x191   : > { %v867_v46 = vpop.f32.mrf.mxu2  ;;  %1836 = vst [vmem:[%s2470_s6 + $0x38] sm:$0xff] %v1814_v45   ;;  %v916_v32 = vpop.f32.mrf.mxu3 }
 0x192   : > { %v868_v47 = vadd.f32 %v867_v46, %v2446_v41 }
 0x194   : > { %v917_v49 = vadd.f32 %v916_v32, %v868_v47 }
 0x196   : > { %v1774_v50 = vpack.c.bf16 %v917_v49, %v915_v48 }
 0x198   : > { %1829 = vst [vmem:[%s2475_s27 + $0x38] sm:$0xff] %v1774_v50  }
 0x199   : > { %2081 = shalt.err (!%p2078_p4)
}
 0x19a   : > { %1864 = dma.vmem_to_hbm [thread:$0]  (%p2264_p3), %s1170_s15, 1024, %s1172_s29, %s2539_s11, %s2164_s30, %s2164_s30, %s2165_s13  }
 0x19b   : > { %s2096_s27 = sshra.s32 %s1189_s24, 4  ;;  %s2102_s6 = scalar_lea.hbm %s2599_s5, 128  ;;  %s2097_s27 = int_to_ptr.hbm [resolvable:$true] %s2096_s27 }
 0x19c   : > { %s2098_s16 = scalar_lea.hbm %s2097_s27, 64  ;;  %p2103_p9 = scmp.lt.s32.totalorder %s2097_s27, %s2599_s5 }
 0x19d   : > { %p2099_p8 = scmp.ne.s32.totalorder %s2097_s27, %s2098_s16  ;;  %p2104_p10 = scmp.lt.s32.totalorder %s2102_s6, %s2098_s16 }
 0x19f   : > { %p2100_p11 = pnand %p2099_p8, %p2264_p3  ;;  %p2105_p12 = por %p2104_p10, %p2103_p9 }
 0x1a1   : > { %p2101_p2 = pneg %p2100_p11 }
 0x1a3   : > { %p2106_p13 = pnand %p2105_p12, %p2101_p2 }
 0x1a5   : > { %2109 = shalt.err (!%p2106_p13)
}
 0x1a6   : > { %1865 = dma.vmem_to_hbm [thread:$0]  (%p2264_p3), %s2535_s12, 1024, %s1189_s24, %s2539_s11, %s2164_s30, %s2164_s30, %s2165_s13  }
 0x1a7 PF: > { %s1203_s15 = sand.u32 1, %s2144_s18   ;;  %p2605_p0 = scmp.ge.s32.totalorder %s2156_s21, 2 }
 0x1a8   : > { %s1204_s29 = scalar_lea.sflag [#allocation4], %s1203_s15 }
 0x1a9   : > { %p1881_p5 = pnand %p2605_p0, %p2233_p6 }
 0x1ab   : > { %p1882_p7 = pneg %p1881_p5 }
 0x1ad   : > { %2135 = dma.done.wait (%p1882_p7), %s1204_s29, 1024  }
 0x1ae   : > { %2137 = vsyncadd (%p1882_p7), %s1204_s29, 4294966272  ;;  %s1213_s17 = sand.u32 1, %s1344_s23  }
 0x1af   : > { %s1214_s9 = scalar_lea.sflag [#allocation10], %s1213_s17 }
 0x1b0   : > { %2139 = dma.done.wait (%p1882_p7), %s1214_s9, 2048  }
 0x1b1   : > { %2141 = vsyncadd (%p1882_p7), %s1214_s9, 4294965248  ;;  %p23_p3 = scmp.ge.s32.totalorder %s2254_s14, 4   ;;  %s2606_s18 = smov %s2148_s19 }
 0x1b2   : > { %s2607_s19 = smov %s2152_s20  ;;  %s2608_s20 = smov %s2270_s26 }
 0x1b3   : > { %s2609_s21 = smov %s2254_s14  ;;  %25 = sbr.rel (!%p23_p3) target bundleno = 8 (0x8), region = 117 }
 0x1b8   :  { %1230 = vsyncpa [#allocation3], 1 }
 0x1b9   :  { %1232 = vsyncpa [#allocation3 + $0x1], 1 }
 0x1ba   :  { %1233 = vsyncpa [#allocation6], 1 }
 0x1bb   :  { %1234 = vsyncpa [#allocation4], 1 }
 0x1bc   :  { %1236 = vsyncpa [#allocation4 + $0x1], 1 }
 0x1bd   :  { %1237 = vsyncpa [#allocation10], 1 }
 0x1be   :  { %1239 = vsyncpa [#allocation10 + $0x1], 1 }

</bundles_post_ra>
